<compile_context>
chip_gen: v7x
topology: tpu7x:2x2x1
jax: 0.10.0
libtpu: 0.0.40
codegen_flags: <defaults>
</compile_context>

<pallas_src>
import functools

import jax
import jax.numpy as jnp
from jax.experimental import pallas as pl
from jax.experimental.pallas import tpu as pltpu


# nn.Linear (y = x @ W.T + b): contract x's last dim with W's last dim via
# dot_general -> no in-kernel transpose / XLU relayout of the weight.
_LINEAR_DIMS = (((1,), (1,)), ((), ()))

_SLACK = 4 << 20          # headroom for Mosaic-internal temporaries


# ----------------------------------------------------------------------------
# VMEM budgeting / tile planning (trace-time Python, concrete shapes)
# ----------------------------------------------------------------------------

def _vmem_cap_bytes():
    """Usable per-core VMEM, generation aware, with headroom."""
    try:
        cap = int(pltpu.get_tpu_info().vmem_capacity_bytes)
    except Exception:                  # conservative fallback = v7x 64 MiB/TC
        cap = 64 << 20
    return max(32 << 20, cap * 7 // 8)


def _vmem_limit(need, cap):
    # Need is planned to be <= cap by the tile-shrinking loops below; the min()
    # only guards pathological configs where even the smallest tiles overflow.
    return int(min(cap, max(need, 16 << 20)))


def _choose_row_tile(total_rows, row_tile):
    """Largest multiple-of-8 tile <= row_tile dividing total_rows, preferring
    >= 2 grid programs so both v7x TensorCores get work."""
    cap = min(row_tile, total_rows)
    tr = total_rows
    t = (cap // 8) * 8
    while t >= 8:
        if total_rows % t == 0:
            tr = t
            break
        t -= 8
    if total_rows // tr < 2 and total_rows >= 16 and (total_rows // 2) % 8 == 0:
        tr = total_rows // 2
    return tr


def _choose_q_tile(B, L, q_tile):
    tq = L
    if L > q_tile:
        t = (q_tile // 8) * 8
        while t >= 8:
            if L % t == 0:
                tq = t
                break
            t -= 8
    # >= 2 grid programs even at batch 1 (v7x has 2 TensorCores)
    if B * (L // tq) < 2 and L >= 16 and (L // 2) % 8 == 0:
        tq = L // 2
    return tq


def _hidden_tile_candidates(hidden):
    """Hidden-axis block sizes, largest first: full, then multiples of 128
    (lane-size) that divide `hidden`."""
    cands = [hidden]
    t = (hidden // 2 // 128) * 128
    while t >= 128:
        if hidden % t == 0:
            cands.append(t)
        t -= 128
    return cands


def _qkv_need(tr, M, wbytes):
    streamed = 2 * 4 * tr * M * wbytes                        # x + q/k/v, dbl-buffered
    resident = 2 * (3 * M * M * wbytes + 3 * M * 4)           # weights + fp32 biases
    temps = 4 * tr * M * 4                                    # fp32 matmul/bias temporaries
    return streamed + resident + temps + _SLACK


def _attn_need(H, L, D, tq, wbytes):
    streamed = 2 * (2 * H * tq * D + 2 * H * L * D) * wbytes  # q/out tiles + K/V
    temps = 3 * H * tq * L * 4 + 2 * H * tq * D * 4           # scores/exp/probs + fp32 ctx
    return streamed + temps + _SLACK


def _ffn_need(tr, M, th, wbytes):
    streamed = 2 * (tr * M * wbytes + 2 * tr * M * 4)         # ctx + x + out, dbl-buffered
    resident = 2 * ((M * M + 2 * th * M) * wbytes + (2 * M + th) * 4)
    scratch = 2 * tr * M * 4                                  # attn_out + fp32 accumulator
    temps = 2 * tr * max(M, th) * 4
    return streamed + resident + scratch + temps + _SLACK


# ----------------------------------------------------------------------------
# Kernels
# ----------------------------------------------------------------------------

def _qkv_kernel(x_ref, wq_ref, bq_ref, wk_ref, bk_ref, wv_ref, bv_ref,
                q_ref, k_ref, v_ref):
    """Fused Q/K/V projections for one row tile (weights VMEM-resident)."""
    x = x_ref[...]                                       # compute-dtype operand

    def proj(w_ref, b_ref):
        y = jax.lax.dot_general(x, w_ref[...], _LINEAR_DIMS,
                                preferred_element_type=jnp.float32)
        return y + b_ref[...]                            # fp32 bias add

    q_ref[...] = proj(wq_ref, bq_ref).astype(q_ref.dtype)
    k_ref[...] = proj(wk_ref, bk_ref).astype(k_ref.dtype)
    v_ref[...] = proj(wv_ref, bv_ref).astype(v_ref.dtype)


def _attn_kernel(q_ref, k_ref, v_ref, ctx_ref, *, scale):
    """Scaled dot-product attention: one batch (all H head-slices) x one query
    tile per grid step; fp32 softmax over the full key axis.
    Note: output lane width is dim_head (<128 is a masked store) - acceptable
    because the contiguous HBM layout lets kernel 3 re-read it lane-dense."""
    q = q_ref[...]                                       # (H, tq, D)
    k = k_ref[...]                                       # (H, L,  D)
    v = v_ref[...]
    s = jnp.einsum("hqd,hkd->hqk", q, k,
                   preferred_element_type=jnp.float32) * scale
    s = s - jnp.max(s, axis=-1, keepdims=True)           # stable softmax
    e = jnp.exp(s)
    p = e / jnp.sum(e, axis=-1, keepdims=True)           # exact divide: exp already
                                                         # saturates the EUP slot
    ctx_ref[...] = jnp.einsum(
        "hqk,hkd->hqd", p.astype(v.dtype), v,
        preferred_element_type=jnp.float32).astype(ctx_ref.dtype)


def _outproj_ffn_kernel(ctx_ref, x_ref, wo_ref, bo_ref, w1_ref, b1_ref,
                        w2_ref, b2_ref, o_ref, attn_sc, acc_sc, *,
                        compute_dtype):
    """fc(context) + x, then fc2(relu(fc1(.))) + residual, per row tile.
    The hidden axis is the (last, "arbitrary") grid dim: only a (th, M)/(M, th)
    slice of W1/W2 is resident per step; relu is elementwise in hidden so the
    per-slice partial products accumulate exactly in fp32.
    TODO(synk): dropout (p=0.3 after fc, p=0.0 in FFN) treated as identity
    (eval-mode); the module's LayerNorms are never called in forward()."""
    k = pl.program_id(1)

    @pl.when(k == 0)
    def _():
        attn_sc[...] = jax.lax.dot_general(
            ctx_ref[...], wo_ref[...], _LINEAR_DIMS,
            preferred_element_type=jnp.float32) + bo_ref[...] + x_ref[...]
        acc_sc[...] = jnp.zeros_like(acc_sc)

    h = jax.lax.dot_general(
        attn_sc[...].astype(compute_dtype), w1_ref[...], _LINEAR_DIMS,
        preferred_element_type=jnp.float32) + b1_ref[...]
    h = jnp.maximum(h, 0.0)                               # relu in fp32
    acc_sc[...] += jax.lax.dot_general(
        h.astype(compute_dtype), w2_ref[...], _LINEAR_DIMS,
        preferred_element_type=jnp.float32)

    @pl.when(k == pl.num_programs(1) - 1)
    def _():
        o_ref[...] = (acc_sc[...] + b2_ref[...] + attn_sc[...]
                      ).astype(o_ref.dtype)


# ----------------------------------------------------------------------------
# Wrapper
# ----------------------------------------------------------------------------

def encoder_forward(x, params, num_head, *, compute_dtype=jnp.bfloat16,
                    row_tile=None, q_tile=512):
    """Forward pass of the PyTorch Encoder (eval mode) via Pallas TPU kernels.

    compute_dtype is the MXU operand dtype (bf16 default -> ~2x matmul
    throughput on v6e/v7x and half the weight/activation/intermediate DMA
    bytes).  Accumulation, bias adds, softmax, relu and residuals are fp32.
    Pass compute_dtype=jnp.float32 for ~1e-5-level agreement with fp32 torch.
    """
    B, L, M = x.shape
    assert M % num_head == 0
    D = M // num_head
    BL, BH = B * L, B * num_head
    f32 = jnp.float32
    wbytes = jnp.dtype(compute_dtype).itemsize
    hidden = params["w1"].shape[0]

    cap = _vmem_cap_bytes()
    if row_tile is None:
        # v5e/v6e (128 MiB VMEM) take 1024-row tiles; v7x (64 MiB) stays at 512.
        row_tile = 1024 if cap >= (96 << 20) else 512

    x_f = x.reshape(BL, M).astype(f32)           # fp32 residual operand (kernel 3)
    x_c = x_f.astype(compute_dtype)              # matmul operand (kernel 1)

    # Weights in the matmul operand dtype; biases stay fp32 (post-accumulate).
    wq = params["wq"].astype(compute_dtype)
    wk = params["wk"].astype(compute_dtype)
    wv = params["wv"].astype(compute_dtype)
    wo = params["wo"].astype(compute_dtype)
    w1 = params["w1"].astype(compute_dtype)
    w2 = params["w2"].astype(compute_dtype)
    bq = params["bq"].reshape(1, M).astype(f32)
    bk = params["bk"].reshape(1, M).astype(f32)
    bv = params["bv"].reshape(1, M).astype(f32)
    bo = params["bo"].reshape(1, M).astype(f32)
    b1 = params["b1"].reshape(1, hidden).astype(f32)
    b2 = params["b2"].reshape(1, M).astype(f32)

    # ---- kernel 1: fused Q/K/V projection (row tiled, weights resident) ----
    tr1 = _choose_row_tile(BL, row_tile)
    while _qkv_need(tr1, M, wbytes) > cap and tr1 % 16 == 0:
        tr1 //= 2
    g1 = BL // tr1

    def row1(cols):
        return pl.BlockSpec((tr1, cols), lambda i: (i, 0))

    def res1(shape):
        return pl.BlockSpec(shape, lambda i: (0, 0))

    q2, k2, v2 = pl.pallas_call(
        _qkv_kernel,
        out_shape=[jax.ShapeDtypeStruct((BL, M), compute_dtype)] * 3,
        grid=(g1,),
        in_specs=[row1(M),
                  res1((M, M)), res1((1, M)),
                  res1((M, M)), res1((1, M)),
                  res1((M, M)), res1((1, M))],
        out_specs=[row1(M)] * 3,
        compiler_params=pltpu.CompilerParams(
            dimension_semantics=("parallel",),
            vmem_limit_bytes=_vmem_limit(_qkv_need(tr1, M, wbytes), cap)),
        cost_estimate=pl.CostEstimate(
            flops=3 * 2 * BL * M * M, transcendentals=0,
            bytes_accessed=int((4 * BL * M + 3 * M * M) * wbytes)),
    )(x_c, wq, bq, wk, bk, wv, bv)

    # PyTorch .view(batch*num_head, -1, dim_head): free bitcast reshapes.
    q3 = q2.reshape(BH, L, D)
    k3 = k2.reshape(BH, L, D)
    v3 = v2.reshape(BH, L, D)

    # ---- kernel 2: attention, grid = (batch, query tiles) ----
    tq = _choose_q_tile(B, L, q_tile)
    while _attn_need(num_head, L, D, tq, wbytes) > cap and tq % 16 == 0:
        tq //= 2
    nq = L // tq

    q_spec = pl.BlockSpec((num_head, tq, D), lambda b, qi: (b, qi, 0))
    kv_spec = pl.BlockSpec((num_head, L, D), lambda b, qi: (b, 0, 0))

    ctx = pl.pallas_call(
        functools.partial(_attn_kernel, scale=float(D) ** -0.5),
        out_shape=jax.ShapeDtypeStruct((BH, L, D), compute_dtype),
        grid=(B, nq),
        in_specs=[q_spec, kv_spec, kv_spec],
        out_specs=q_spec,
        compiler_params=pltpu.CompilerParams(
            dimension_semantics=("parallel", "parallel"),
            vmem_limit_bytes=_vmem_limit(
                _attn_need(num_head, L, D, tq, wbytes), cap)),
        cost_estimate=pl.CostEstimate(
            flops=4 * BH * L * L * D, transcendentals=BH * L * L,
            bytes_accessed=int(4 * BH * L * D * wbytes)),
    )(q3, k3, v3)

    # PyTorch .view(batch, -1, num_head*dim_head): free bitcast reshape.
    ctx2 = ctx.reshape(BL, M)

    # ---- kernel 3: out-proj + residual + FFN (hidden-blocked) + residual ----
    tr3 = _choose_row_tile(BL, row_tile)
    cands = _hidden_tile_candidates(hidden)
    th = cands[-1]
    for cand in cands:
        if _ffn_need(tr3, M, cand, wbytes) <= cap:
            th = cand
            break
    while _ffn_need(tr3, M, th, wbytes) > cap and tr3 % 16 == 0:
        tr3 //= 2
    g3 = BL // tr3
    nk = hidden // th

    out = pl.pallas_call(
        functools.partial(_outproj_ffn_kernel, compute_dtype=compute_dtype),
        out_shape=jax.ShapeDtypeStruct((BL, M), f32),
        grid=(g3, nk),
        in_specs=[pl.BlockSpec((tr3, M), lambda i, k: (i, 0)),   # context
                  pl.BlockSpec((tr3, M), lambda i, k: (i, 0)),   # x residual
                  pl.BlockSpec((M, M), lambda i, k: (0, 0)),     # Wo (resident)
                  pl.BlockSpec((1, M), lambda i, k: (0, 0)),     # bo
                  pl.BlockSpec((th, M), lambda i, k: (k, 0)),    # W1 slice
                  pl.BlockSpec((1, th), lambda i, k: (0, k)),    # b1 slice
                  pl.BlockSpec((M, th), lambda i, k: (0, k)),    # W2 slice
                  pl.BlockSpec((1, M), lambda i, k: (0, 0))],    # b2
        out_specs=pl.BlockSpec((tr3, M), lambda i, k: (i, 0)),
        scratch_shapes=[pltpu.VMEM((tr3, M), f32),    # attn_out, reused over k
                        pltpu.VMEM((tr3, M), f32)],   # fp32 FFN accumulator
        compiler_params=pltpu.CompilerParams(
            dimension_semantics=("parallel", "arbitrary"),
            vmem_limit_bytes=_vmem_limit(_ffn_need(tr3, M, th, wbytes), cap)),
        cost_estimate=pl.CostEstimate(
            flops=2 * BL * M * M + 4 * BL * M * hidden, transcendentals=0,
            bytes_accessed=int((BL * M + M * M + 2 * M * hidden) * wbytes
                               + 2 * BL * M * 4)),
    )(ctx2, x_f, wo, bo, w1, b1, w2, b2)

    return out.reshape(B, L, M)


# ----------------------------------------------------------------------------
# Pure-JAX reference (mirrors the PyTorch forward, eval-mode dropout)
# ----------------------------------------------------------------------------

def encoder_ref(x, p, num_head):
    B, L, M = x.shape
    D = M // num_head

    def lin(y, w, b):
        return y @ w.T + b

    Q = lin(x, p["wq"], p["bq"]).reshape(B * num_head, -1, D)
    K = lin(x, p["wk"], p["bk"]).reshape(B * num_head, -1, D)
    V = lin(x, p["wv"], p["bv"]).reshape(B * num_head, -1, D)
    scale = D ** (-0.5)
    a = jnp.einsum("bqd,bkd->bqk", Q, K) * scale
    a = jax.nn.softmax(a, axis=-1)
    ctx = jnp.einsum("bqk,bkd->bqd", a, V).reshape(B, -1, num_head * D)
    out = lin(ctx, p["wo"], p["bo"]) + x
    h = jax.nn.relu(lin(out, p["w1"], p["b1"]))
    return lin(h, p["w2"], p["b2"]) + out


# ----------------------------------------------------------------------------
# Parameter init (deterministic, nn.Linear-style uniform bounds)
# ----------------------------------------------------------------------------

def init_params(key, dim_model, hidden):
    ks = jax.random.split(key, 12)

    def lin_init(kw, kb, out_f, in_f):
        bound = 1.0 / (in_f ** 0.5)
        w = jax.random.uniform(kw, (out_f, in_f), jnp.float32, -bound, bound)
        b = jax.random.uniform(kb, (out_f,), jnp.float32, -bound, bound)
        return w, b

    wq, bq = lin_init(ks[0], ks[1], dim_model, dim_model)
    wk, bk = lin_init(ks[2], ks[3], dim_model, dim_model)
    wv, bv = lin_init(ks[4], ks[5], dim_model, dim_model)
    wo, bo = lin_init(ks[6], ks[7], dim_model, dim_model)
    w1, b1 = lin_init(ks[8], ks[9], hidden, dim_model)
    w2, b2 = lin_init(ks[10], ks[11], dim_model, hidden)
    return dict(wq=wq, bq=bq, wk=wk, bk=bk, wv=wv, bv=bv,
                wo=wo, bo=bo, w1=w1, b1=b1, w2=w2, b2=b2)


if __name__ == "__main__":
    # Encoder(dim_model=32, num_head=4, hidden=64, dropout) in eval mode;
    # x: (batch=2, seq=8, dim_model=32), dim_head=8.
    B, L, M, H, HID = 2, 8, 32, 4, 64

    key = jax.random.PRNGKey(0)
    k_params, k_x = jax.random.split(key)
    params = init_params(k_params, M, HID)
    x = jax.random.normal(k_x, (B, L, M), jnp.float32)

    ref = encoder_ref(x, params, H)

    # Default bf16-operand path (fp32 accumulation / elementwise).
    fwd_bf16 = jax.jit(functools.partial(encoder_forward, num_head=H))
    out_bf16 = jax.block_until_ready(fwd_bf16(x, params))
    assert out_bf16.shape == (B, L, M)
    err_bf16 = float(jnp.max(jnp.abs(out_bf16 - ref)))
    assert jnp.allclose(out_bf16, ref, atol=5e-2, rtol=5e-2), (
        f"bf16 max abs err = {err_bf16}")

    # fp32-operand path for tight numerical verification.
    fwd_f32 = jax.jit(functools.partial(encoder_forward, num_head=H,
                                        compute_dtype=jnp.float32))
    out_f32 = jax.block_until_ready(fwd_f32(x, params))
    err_f32 = float(jnp.max(jnp.abs(out_f32 - ref)))
    assert jnp.allclose(out_f32, ref, atol=1e-4, rtol=1e-4), (
        f"f32 max abs err = {err_f32}")

    print("KERNEL_OK")
</pallas_src>

<mosaic_0001>
module attributes {stable_mosaic.version = 11 : i64} {
  func.func @_qkv_kernel(%arg0: i32, %arg1: memref<8x32xbf16, #tpu.memory_space<vmem>>, %arg2: memref<32x32xbf16, #tpu.memory_space<vmem>>, %arg3: memref<1x32xf32, #tpu.memory_space<vmem>>, %arg4: memref<32x32xbf16, #tpu.memory_space<vmem>>, %arg5: memref<1x32xf32, #tpu.memory_space<vmem>>, %arg6: memref<32x32xbf16, #tpu.memory_space<vmem>>, %arg7: memref<1x32xf32, #tpu.memory_space<vmem>>, %arg8: memref<8x32xbf16, #tpu.memory_space<vmem>>, %arg9: memref<8x32xbf16, #tpu.memory_space<vmem>>, %arg10: memref<8x32xbf16, #tpu.memory_space<vmem>>) attributes {dimension_semantics = [#tpu.dimension_semantics<parallel>], iteration_bounds = array<i64: 2>, scalar_prefetch = 0 : i64, scratch_operands = 0 : i64, tpu.core_type = #tpu.core_type<tc>, window_params = [{transform_indices = @transform_0, window_bounds = array<i64: 8, 32>}, {pipeline_mode = #tpu.pipeline_mode<synchronous>, transform_indices = @transform_1, window_bounds = array<i64: 32, 32>}, {pipeline_mode = #tpu.pipeline_mode<synchronous>, transform_indices = @transform_2, window_bounds = array<i64: 1, 32>}, {pipeline_mode = #tpu.pipeline_mode<synchronous>, transform_indices = @transform_3, window_bounds = array<i64: 32, 32>}, {pipeline_mode = #tpu.pipeline_mode<synchronous>, transform_indices = @transform_4, window_bounds = array<i64: 1, 32>}, {pipeline_mode = #tpu.pipeline_mode<synchronous>, transform_indices = @transform_5, window_bounds = array<i64: 32, 32>}, {pipeline_mode = #tpu.pipeline_mode<synchronous>, transform_indices = @transform_6, window_bounds = array<i64: 1, 32>}, {transform_indices = @transform_7, window_bounds = array<i64: 8, 32>}, {transform_indices = @transform_8, window_bounds = array<i64: 8, 32>}, {transform_indices = @transform_9, window_bounds = array<i64: 8, 32>}]} {
    %c0 = arith.constant 0 : index
    %c0_0 = arith.constant 0 : index
    %0 = vector.load %arg1[%c0, %c0_0] : memref<8x32xbf16, #tpu.memory_space<vmem>>, vector<8x32xbf16>
    %c0_1 = arith.constant 0 : index
    %c0_2 = arith.constant 0 : index
    %1 = vector.load %arg2[%c0_1, %c0_2] : memref<32x32xbf16, #tpu.memory_space<vmem>>, vector<32x32xbf16>
    %cst = arith.constant dense<0.000000e+00> : vector<8x32xf32>
    %2 = tpu.matmul %0, %1, %cst {dimension_numbers = #tpu.dot_dimension_numbers<[1], [1], [0], [0], [0, 0, 1, 0], [], []>} : vector<8x32xbf16>, vector<32x32xbf16>, vector<8x32xf32> -> vector<8x32xf32>
    %c0_3 = arith.constant 0 : index
    %c0_4 = arith.constant 0 : index
    %3 = vector.load %arg3[%c0_3, %c0_4] : memref<1x32xf32, #tpu.memory_space<vmem>>, vector<1x32xf32>
    %4 = vector.broadcast %3 : vector<1x32xf32> to vector<8x32xf32>
    %5 = arith.addf %2, %4 : vector<8x32xf32>
    %6 = arith.truncf %5 : vector<8x32xf32> to vector<8x32xbf16>
    %c0_5 = arith.constant 0 : index
    %c0_6 = arith.constant 0 : index
    %7 = vector.load %arg8[%c0_5, %c0_6] : memref<8x32xbf16, #tpu.memory_space<vmem>>, vector<8x32xbf16>
    tpu.vector_store %arg8[%c0_5, %c0_6], %6 {strides = array<i32>} : memref<8x32xbf16, #tpu.memory_space<vmem>>, vector<8x32xbf16>,
    %c0_7 = arith.constant 0 : index
    %c0_8 = arith.constant 0 : index
    %8 = vector.load %arg4[%c0_7, %c0_8] : memref<32x32xbf16, #tpu.memory_space<vmem>>, vector<32x32xbf16>
    %cst_9 = arith.constant dense<0.000000e+00> : vector<8x32xf32>
    %9 = tpu.matmul %0, %8, %cst_9 {dimension_numbers = #tpu.dot_dimension_numbers<[1], [1], [0], [0], [0, 0, 1, 0], [], []>} : vector<8x32xbf16>, vector<32x32xbf16>, vector<8x32xf32> -> vector<8x32xf32>
    %c0_10 = arith.constant 0 : index
    %c0_11 = arith.constant 0 : index
    %10 = vector.load %arg5[%c0_10, %c0_11] : memref<1x32xf32, #tpu.memory_space<vmem>>, vector<1x32xf32>
    %11 = vector.broadcast %10 : vector<1x32xf32> to vector<8x32xf32>
    %12 = arith.addf %9, %11 : vector<8x32xf32>
    %13 = arith.truncf %12 : vector<8x32xf32> to vector<8x32xbf16>
    %c0_12 = arith.constant 0 : index
    %c0_13 = arith.constant 0 : index
    %14 = vector.load %arg9[%c0_12, %c0_13] : memref<8x32xbf16, #tpu.memory_space<vmem>>, vector<8x32xbf16>
    tpu.vector_store %arg9[%c0_12, %c0_13], %13 {strides = array<i32>} : memref<8x32xbf16, #tpu.memory_space<vmem>>, vector<8x32xbf16>,
    %c0_14 = arith.constant 0 : index
    %c0_15 = arith.constant 0 : index
    %15 = vector.load %arg6[%c0_14, %c0_15] : memref<32x32xbf16, #tpu.memory_space<vmem>>, vector<32x32xbf16>
    %cst_16 = arith.constant dense<0.000000e+00> : vector<8x32xf32>
    %16 = tpu.matmul %0, %15, %cst_16 {dimension_numbers = #tpu.dot_dimension_numbers<[1], [1], [0], [0], [0, 0, 1, 0], [], []>} : vector<8x32xbf16>, vector<32x32xbf16>, vector<8x32xf32> -> vector<8x32xf32>
    %c0_17 = arith.constant 0 : index
    %c0_18 = arith.constant 0 : index
    %17 = vector.load %arg7[%c0_17, %c0_18] : memref<1x32xf32, #tpu.memory_space<vmem>>, vector<1x32xf32>
    %18 = vector.broadcast %17 : vector<1x32xf32> to vector<8x32xf32>
    %19 = arith.addf %16, %18 : vector<8x32xf32>
    %20 = arith.truncf %19 : vector<8x32xf32> to vector<8x32xbf16>
    %c0_19 = arith.constant 0 : index
    %c0_20 = arith.constant 0 : index
    %21 = vector.load %arg10[%c0_19, %c0_20] : memref<8x32xbf16, #tpu.memory_space<vmem>>, vector<8x32xbf16>
    tpu.vector_store %arg10[%c0_19, %c0_20], %20 {strides = array<i32>} : memref<8x32xbf16, #tpu.memory_space<vmem>>, vector<8x32xbf16>,
    return
  }
  func.func @transform_0(%arg0: i32) -> (i32, i32) {
    %c0_i32 = arith.constant 0 : i32
    %c0_i32_0 = arith.constant 0 : i32
    return %arg0, %c0_i32 : i32, i32
  }
  func.func @transform_1(%arg0: i32) -> (i32, i32) {
    %c0_i32 = arith.constant 0 : i32
    %c0_i32_0 = arith.constant 0 : i32
    %c0_i32_1 = arith.constant 0 : i32
    return %c0_i32, %c0_i32_0 : i32, i32
  }
  func.func @transform_2(%arg0: i32) -> (i32, i32) {
    %c0_i32 = arith.constant 0 : i32
    %c0_i32_0 = arith.constant 0 : i32
    %c0_i32_1 = arith.constant 0 : i32
    return %c0_i32, %c0_i32_0 : i32, i32
  }
  func.func @transform_3(%arg0: i32) -> (i32, i32) {
    %c0_i32 = arith.constant 0 : i32
    %c0_i32_0 = arith.constant 0 : i32
    %c0_i32_1 = arith.constant 0 : i32
    return %c0_i32, %c0_i32_0 : i32, i32
  }
  func.func @transform_4(%arg0: i32) -> (i32, i32) {
    %c0_i32 = arith.constant 0 : i32
    %c0_i32_0 = arith.constant 0 : i32
    %c0_i32_1 = arith.constant 0 : i32
    return %c0_i32, %c0_i32_0 : i32, i32
  }
  func.func @transform_5(%arg0: i32) -> (i32, i32) {
    %c0_i32 = arith.constant 0 : i32
    %c0_i32_0 = arith.constant 0 : i32
    %c0_i32_1 = arith.constant 0 : i32
    return %c0_i32, %c0_i32_0 : i32, i32
  }
  func.func @transform_6(%arg0: i32) -> (i32, i32) {
    %c0_i32 = arith.constant 0 : i32
    %c0_i32_0 = arith.constant 0 : i32
    %c0_i32_1 = arith.constant 0 : i32
    return %c0_i32, %c0_i32_0 : i32, i32
  }
  func.func @transform_7(%arg0: i32) -> (i32, i32) {
    %c0_i32 = arith.constant 0 : i32
    %c0_i32_0 = arith.constant 0 : i32
    return %arg0, %c0_i32 : i32, i32
  }
  func.func @transform_8(%arg0: i32) -> (i32, i32) {
    %c0_i32 = arith.constant 0 : i32
    %c0_i32_0 = arith.constant 0 : i32
    return %arg0, %c0_i32 : i32, i32
  }
  func.func @transform_9(%arg0: i32) -> (i32, i32) {
    %c0_i32 = arith.constant 0 : i32
    %c0_i32_0 = arith.constant 0 : i32
    return %arg0, %c0_i32 : i32, i32
  }
}

module attributes {stable_mosaic.version = 11 : i64} {
  func.func @_attn_kernel(%arg0: i32, %arg1: i32, %arg2: memref<4x8x8xbf16, #tpu.memory_space<vmem>>, %arg3: memref<4x8x8xbf16, #tpu.memory_space<vmem>>, %arg4: memref<4x8x8xbf16, #tpu.memory_space<vmem>>, %arg5: memref<4x8x8xbf16, #tpu.memory_space<vmem>>) attributes {dimension_semantics = [#tpu.dimension_semantics<parallel>, #tpu.dimension_semantics<parallel>], iteration_bounds = array<i64: 2, 1>, scalar_prefetch = 0 : i64, scratch_operands = 0 : i64, tpu.core_type = #tpu.core_type<tc>, window_params = [{transform_indices = @transform_0, window_bounds = array<i64: 4, 8, 8>}, {transform_indices = @transform_1, window_bounds = array<i64: 4, 8, 8>}, {transform_indices = @transform_2, window_bounds = array<i64: 4, 8, 8>}, {transform_indices = @transform_3, window_bounds = array<i64: 4, 8, 8>}]} {
    %c0 = arith.constant 0 : index
    %c0_0 = arith.constant 0 : index
    %c0_1 = arith.constant 0 : index
    %0 = vector.load %arg2[%c0, %c0_0, %c0_1] : memref<4x8x8xbf16, #tpu.memory_space<vmem>>, vector<4x8x8xbf16>
    %c0_2 = arith.constant 0 : index
    %c0_3 = arith.constant 0 : index
    %c0_4 = arith.constant 0 : index
    %1 = vector.load %arg3[%c0_2, %c0_3, %c0_4] : memref<4x8x8xbf16, #tpu.memory_space<vmem>>, vector<4x8x8xbf16>
    %c0_5 = arith.constant 0 : index
    %c0_6 = arith.constant 0 : index
    %c0_7 = arith.constant 0 : index
    %2 = vector.load %arg4[%c0_5, %c0_6, %c0_7] : memref<4x8x8xbf16, #tpu.memory_space<vmem>>, vector<4x8x8xbf16>
    "tpu.trace_start"() <{level = 10 : i32, message = "hqd,hkd->hqk"}> : () -> ()
    %cst = arith.constant dense<0.000000e+00> : vector<4x8x8xf32>
    %3 = tpu.matmul %0, %1, %cst {dimension_numbers = #tpu.dot_dimension_numbers<[2], [2], [1], [1], [0, 0, 0, 1, 1, 1], [0], [0]>} : vector<4x8x8xbf16>, vector<4x8x8xbf16>, vector<4x8x8xf32> -> vector<4x8x8xf32>
    "tpu.trace_stop"() : () -> ()
    %cst_8 = arith.constant 0.353553385 : f32
    %4 = vector.broadcast %cst_8 : f32 to vector<4x8x8xf32>
    %5 = arith.mulf %3, %4 : vector<4x8x8xf32>
    %cst_9 = arith.constant dense<0xFF800000> : vector<4x8xf32>
    %6 = vector.multi_reduction <maximumf>, %5, %cst_9 [2] : vector<4x8x8xf32> to vector<4x8xf32>
    %7 = vector.shape_cast %6 : vector<4x8xf32> to vector<4x8x1xf32>
    %8 = vector.broadcast %7 : vector<4x8x1xf32> to vector<4x8x8xf32>
    %9 = arith.subf %5, %8 : vector<4x8x8xf32>
    %10 = math.exp %9 : vector<4x8x8xf32>
    %cst_10 = arith.constant dense<0.000000e+00> : vector<4x8xf32>
    %11 = vector.multi_reduction <add>, %10, %cst_10 [2] : vector<4x8x8xf32> to vector<4x8xf32>
    %12 = vector.shape_cast %11 : vector<4x8xf32> to vector<4x8x1xf32>
    %13 = vector.broadcast %12 : vector<4x8x1xf32> to vector<4x8x8xf32>
    %14 = arith.divf %10, %13 : vector<4x8x8xf32>
    %15 = arith.truncf %14 : vector<4x8x8xf32> to vector<4x8x8xbf16>
    "tpu.trace_start"() <{level = 10 : i32, message = "hqk,hkd->hqd"}> : () -> ()
    %cst_11 = arith.constant dense<0.000000e+00> : vector<4x8x8xf32>
    %16 = tpu.matmul %15, %2, %cst_11 {dimension_numbers = #tpu.dot_dimension_numbers<[2], [1], [1], [2], [0, 0, 0, 1, 1, 2], [0], [0]>} : vector<4x8x8xbf16>, vector<4x8x8xbf16>, vector<4x8x8xf32> -> vector<4x8x8xf32>
    "tpu.trace_stop"() : () -> ()
    %17 = arith.truncf %16 : vector<4x8x8xf32> to vector<4x8x8xbf16>
    %c0_12 = arith.constant 0 : index
    %c0_13 = arith.constant 0 : index
    %c0_14 = arith.constant 0 : index
    %18 = vector.load %arg5[%c0_12, %c0_13, %c0_14] : memref<4x8x8xbf16, #tpu.memory_space<vmem>>, vector<4x8x8xbf16>
    tpu.vector_store %arg5[%c0_12, %c0_13, %c0_14], %17 {strides = array<i32>} : memref<4x8x8xbf16, #tpu.memory_space<vmem>>, vector<4x8x8xbf16>,
    return
  }
  func.func @transform_0(%arg0: i32, %arg1: i32) -> (i32, i32, i32) {
    %c0_i32 = arith.constant 0 : i32
    %c0_i32_0 = arith.constant 0 : i32
    return %arg0, %arg1, %c0_i32 : i32, i32, i32
  }
  func.func @transform_1(%arg0: i32, %arg1: i32) -> (i32, i32, i32) {
    %c0_i32 = arith.constant 0 : i32
    %c0_i32_0 = arith.constant 0 : i32
    %c0_i32_1 = arith.constant 0 : i32
    return %arg0, %c0_i32, %c0_i32_0 : i32, i32, i32
  }
  func.func @transform_2(%arg0: i32, %arg1: i32) -> (i32, i32, i32) {
    %c0_i32 = arith.constant 0 : i32
    %c0_i32_0 = arith.constant 0 : i32
    %c0_i32_1 = arith.constant 0 : i32
    return %arg0, %c0_i32, %c0_i32_0 : i32, i32, i32
  }
  func.func @transform_3(%arg0: i32, %arg1: i32) -> (i32, i32, i32) {
    %c0_i32 = arith.constant 0 : i32
    %c0_i32_0 = arith.constant 0 : i32
    return %arg0, %arg1, %c0_i32 : i32, i32, i32
  }
}

module attributes {stable_mosaic.version = 11 : i64} {
  func.func @_outproj_ffn_kernel(%arg0: i32, %arg1: i32, %arg2: memref<8x32xbf16, #tpu.memory_space<vmem>>, %arg3: memref<8x32xf32, #tpu.memory_space<vmem>>, %arg4: memref<32x32xbf16, #tpu.memory_space<vmem>>, %arg5: memref<1x32xf32, #tpu.memory_space<vmem>>, %arg6: memref<64x32xbf16, #tpu.memory_space<vmem>>, %arg7: memref<1x64xf32, #tpu.memory_space<vmem>>, %arg8: memref<32x64xbf16, #tpu.memory_space<vmem>>, %arg9: memref<1x32xf32, #tpu.memory_space<vmem>>, %arg10: memref<8x32xf32, #tpu.memory_space<vmem>>, %arg11: memref<8x32xf32, #tpu.memory_space<vmem>>, %arg12: memref<8x32xf32, #tpu.memory_space<vmem>>) attributes {dimension_semantics = [#tpu.dimension_semantics<parallel>, #tpu.dimension_semantics<arbitrary>], iteration_bounds = array<i64: 2, 1>, scalar_prefetch = 0 : i64, scratch_operands = 2 : i64, tpu.core_type = #tpu.core_type<tc>, window_params = [{transform_indices = @transform_0, window_bounds = array<i64: 8, 32>}, {transform_indices = @transform_1, window_bounds = array<i64: 8, 32>}, {pipeline_mode = #tpu.pipeline_mode<synchronous>, transform_indices = @transform_2, window_bounds = array<i64: 32, 32>}, {pipeline_mode = #tpu.pipeline_mode<synchronous>, transform_indices = @transform_3, window_bounds = array<i64: 1, 32>}, {transform_indices = @transform_4, window_bounds = array<i64: 64, 32>}, {transform_indices = @transform_5, window_bounds = array<i64: 1, 64>}, {transform_indices = @transform_6, window_bounds = array<i64: 32, 64>}, {pipeline_mode = #tpu.pipeline_mode<synchronous>, transform_indices = @transform_7, window_bounds = array<i64: 1, 32>}, {transform_indices = @transform_8, window_bounds = array<i64: 8, 32>}]} {
    %c0_i32 = arith.constant 0 : i32
    %0 = arith.cmpi eq, %arg1, %c0_i32 : i32
    %1 = arith.extui %0 : i1 to i32
    %c0_i32_0 = arith.constant 0 : i32
    %2 = arith.cmpi ne, %1, %c0_i32_0 : i32
    scf.if %2 {
      %c0_16 = arith.constant 0 : index
      %c0_17 = arith.constant 0 : index
      %21 = vector.load %arg2[%c0_16, %c0_17] : memref<8x32xbf16, #tpu.memory_space<vmem>>, vector<8x32xbf16>
      %c0_18 = arith.constant 0 : index
      %c0_19 = arith.constant 0 : index
      %22 = vector.load %arg4[%c0_18, %c0_19] : memref<32x32xbf16, #tpu.memory_space<vmem>>, vector<32x32xbf16>
      %cst_20 = arith.constant dense<0.000000e+00> : vector<8x32xf32>
      %23 = tpu.matmul %21, %22, %cst_20 {dimension_numbers = #tpu.dot_dimension_numbers<[1], [1], [0], [0], [0, 0, 1, 0], [], []>} : vector<8x32xbf16>, vector<32x32xbf16>, vector<8x32xf32> -> vector<8x32xf32>
      %c0_21 = arith.constant 0 : index
      %c0_22 = arith.constant 0 : index
      %24 = vector.load %arg5[%c0_21, %c0_22] : memref<1x32xf32, #tpu.memory_space<vmem>>, vector<1x32xf32>
      %25 = vector.broadcast %24 : vector<1x32xf32> to vector<8x32xf32>
      %26 = arith.addf %23, %25 : vector<8x32xf32>
      %c0_23 = arith.constant 0 : index
      %c0_24 = arith.constant 0 : index
      %27 = vector.load %arg3[%c0_23, %c0_24] : memref<8x32xf32, #tpu.memory_space<vmem>>, vector<8x32xf32>
      %28 = arith.addf %26, %27 : vector<8x32xf32>
      %c0_25 = arith.constant 0 : index
      %c0_26 = arith.constant 0 : index
      %29 = vector.load %arg11[%c0_25, %c0_26] : memref<8x32xf32, #tpu.memory_space<vmem>>, vector<8x32xf32>
      tpu.vector_store %arg11[%c0_25, %c0_26], %28 {strides = array<i32>} : memref<8x32xf32, #tpu.memory_space<vmem>>, vector<8x32xf32>,
      %cst_27 = arith.constant 0.000000e+00 : f32
      %30 = vector.broadcast %cst_27 : f32 to vector<8x32xf32>
      %c0_28 = arith.constant 0 : index
      %c0_29 = arith.constant 0 : index
      %31 = vector.load %arg12[%c0_28, %c0_29] : memref<8x32xf32, #tpu.memory_space<vmem>>, vector<8x32xf32>
      tpu.vector_store %arg12[%c0_28, %c0_29], %30 {strides = array<i32>} : memref<8x32xf32, #tpu.memory_space<vmem>>, vector<8x32xf32>,
    } else {
    }
    %c0 = arith.constant 0 : index
    %c0_1 = arith.constant 0 : index
    %3 = vector.load %arg11[%c0, %c0_1] : memref<8x32xf32, #tpu.memory_space<vmem>>, vector<8x32xf32>
    %4 = arith.truncf %3 : vector<8x32xf32> to vector<8x32xbf16>
    %c0_2 = arith.constant 0 : index
    %c0_3 = arith.constant 0 : index
    %5 = vector.load %arg6[%c0_2, %c0_3] : memref<64x32xbf16, #tpu.memory_space<vmem>>, vector<64x32xbf16>
    %cst = arith.constant dense<0.000000e+00> : vector<8x64xf32>
    %6 = tpu.matmul %4, %5, %cst {dimension_numbers = #tpu.dot_dimension_numbers<[1], [1], [0], [0], [0, 0, 1, 0], [], []>} : vector<8x32xbf16>, vector<64x32xbf16>, vector<8x64xf32> -> vector<8x64xf32>
    %c0_4 = arith.constant 0 : index
    %c0_5 = arith.constant 0 : index
    %7 = vector.load %arg7[%c0_4, %c0_5] : memref<1x64xf32, #tpu.memory_space<vmem>>, vector<1x64xf32>
    %8 = vector.broadcast %7 : vector<1x64xf32> to vector<8x64xf32>
    %9 = arith.addf %6, %8 : vector<8x64xf32>
    %cst_6 = arith.constant 0.000000e+00 : f32
    %10 = vector.broadcast %cst_6 : f32 to vector<8x64xf32>
    %11 = arith.maximumf %9, %10 : vector<8x64xf32>
    %c0_7 = arith.constant 0 : index
    %c0_8 = arith.constant 0 : index
    %12 = vector.load %arg12[%c0_7, %c0_8] : memref<8x32xf32, #tpu.memory_space<vmem>>, vector<8x32xf32>
    %13 = arith.truncf %11 : vector<8x64xf32> to vector<8x64xbf16>
    %c0_9 = arith.constant 0 : index
    %c0_10 = arith.constant 0 : index
    %14 = vector.load %arg8[%c0_9, %c0_10] : memref<32x64xbf16, #tpu.memory_space<vmem>>, vector<32x64xbf16>
    %cst_11 = arith.constant dense<0.000000e+00> : vector<8x32xf32>
    %15 = tpu.matmul %13, %14, %cst_11 {dimension_numbers = #tpu.dot_dimension_numbers<[1], [1], [0], [0], [0, 0, 1, 0], [], []>} : vector<8x64xbf16>, vector<32x64xbf16>, vector<8x32xf32> -> vector<8x32xf32>
    %16 = arith.addf %12, %15 : vector<8x32xf32>
    %c0_12 = arith.constant 0 : index
    %c0_13 = arith.constant 0 : index
    %17 = vector.load %arg12[%c0_12, %c0_13] : memref<8x32xf32, #tpu.memory_space<vmem>>, vector<8x32xf32>
    tpu.vector_store %arg12[%c0_12, %c0_13], %16 {strides = array<i32>} : memref<8x32xf32, #tpu.memory_space<vmem>>, vector<8x32xf32>,
    %c0_i32_14 = arith.constant 0 : i32
    %18 = arith.cmpi eq, %arg1, %c0_i32_14 : i32
    %19 = arith.extui %18 : i1 to i32
    %c0_i32_15 = arith.constant 0 : i32
    %20 = arith.cmpi ne, %19, %c0_i32_15 : i32
    scf.if %20 {
      %c0_16 = arith.constant 0 : index
      %c0_17 = arith.constant 0 : index
      %21 = vector.load %arg12[%c0_16, %c0_17] : memref<8x32xf32, #tpu.memory_space<vmem>>, vector<8x32xf32>
      %c0_18 = arith.constant 0 : index
      %c0_19 = arith.constant 0 : index
      %22 = vector.load %arg9[%c0_18, %c0_19] : memref<1x32xf32, #tpu.memory_space<vmem>>, vector<1x32xf32>
      %23 = vector.broadcast %22 : vector<1x32xf32> to vector<8x32xf32>
      %24 = arith.addf %21, %23 : vector<8x32xf32>
      %c0_20 = arith.constant 0 : index
      %c0_21 = arith.constant 0 : index
      %25 = vector.load %arg11[%c0_20, %c0_21] : memref<8x32xf32, #tpu.memory_space<vmem>>, vector<8x32xf32>
      %26 = arith.addf %24, %25 : vector<8x32xf32>
      %c0_22 = arith.constant 0 : index
      %c0_23 = arith.constant 0 : index
      %27 = vector.load %arg10[%c0_22, %c0_23] : memref<8x32xf32, #tpu.memory_space<vmem>>, vector<8x32xf32>
      tpu.vector_store %arg10[%c0_22, %c0_23], %26 {strides = array<i32>} : memref<8x32xf32, #tpu.memory_space<vmem>>, vector<8x32xf32>,
    } else {
    }
    return
  }
  func.func @transform_0(%arg0: i32, %arg1: i32) -> (i32, i32) {
    %c0_i32 = arith.constant 0 : i32
    %c0_i32_0 = arith.constant 0 : i32
    return %arg0, %c0_i32 : i32, i32
  }
  func.func @transform_1(%arg0: i32, %arg1: i32) -> (i32, i32) {
    %c0_i32 = arith.constant 0 : i32
    %c0_i32_0 = arith.constant 0 : i32
    return %arg0, %c0_i32 : i32, i32
  }
  func.func @transform_2(%arg0: i32, %arg1: i32) -> (i32, i32) {
    %c0_i32 = arith.constant 0 : i32
    %c0_i32_0 = arith.constant 0 : i32
    %c0_i32_1 = arith.constant 0 : i32
    return %c0_i32, %c0_i32_0 : i32, i32
  }
  func.func @transform_3(%arg0: i32, %arg1: i32) -> (i32, i32) {
    %c0_i32 = arith.constant 0 : i32
    %c0_i32_0 = arith.constant 0 : i32
    %c0_i32_1 = arith.constant 0 : i32
    return %c0_i32, %c0_i32_0 : i32, i32
  }
  func.func @transform_4(%arg0: i32, %arg1: i32) -> (i32, i32) {
    %c0_i32 = arith.constant 0 : i32
    %c0_i32_0 = arith.constant 0 : i32
    return %arg1, %c0_i32 : i32, i32
  }
  func.func @transform_5(%arg0: i32, %arg1: i32) -> (i32, i32) {
    %c0_i32 = arith.constant 0 : i32
    %c0_i32_0 = arith.constant 0 : i32
    return %c0_i32, %arg1 : i32, i32
  }
  func.func @transform_6(%arg0: i32, %arg1: i32) -> (i32, i32) {
    %c0_i32 = arith.constant 0 : i32
    %c0_i32_0 = arith.constant 0 : i32
    return %c0_i32, %arg1 : i32, i32
  }
  func.func @transform_7(%arg0: i32, %arg1: i32) -> (i32, i32) {
    %c0_i32 = arith.constant 0 : i32
    %c0_i32_0 = arith.constant 0 : i32
    %c0_i32_1 = arith.constant 0 : i32
    return %c0_i32, %c0_i32_0 : i32, i32
  }
  func.func @transform_8(%arg0: i32, %arg1: i32) -> (i32, i32) {
    %c0_i32 = arith.constant 0 : i32
    %c0_i32_0 = arith.constant 0 : i32
    return %arg0, %c0_i32 : i32, i32
  }
}

</mosaic_0001>

<bundles_post_ra>
// kernel: encoder_forward.3
= control target key start
LH: loop header
LB: loop body
LE: loop exit
PB: predicated region body
PF: predicated region fallthrough
CT: control target
= control target key end

     0   :  { %s810_s30 = smov 0   ;;  %s881_s0 = inlined_call_operand.vmem [shape: bf16[16,32], index: 0, kind: input, shape index: {}]   ;;  %s882_s1 = inlined_call_operand.vmem [shape: bf16[32,32], index: 1, kind: input, shape index: {}]   ;;  %s883_s2 = inlined_call_operand.vmem [shape: f32[1,32], index: 2, kind: input, shape index: {}]   ;;  %s884_s3 = inlined_call_operand.vmem [shape: bf16[32,32], index: 3, kind: input, shape index: {}]   ;;  %s885_s4 = inlined_call_operand.vmem [shape: f32[1,32], index: 4, kind: input, shape index: {}]   ;;  %s886_s5 = inlined_call_operand.vmem [shape: bf16[32,32], index: 5, kind: input, shape index: {}]   ;;  %s887_s6 = inlined_call_operand.vmem [shape: f32[1,32], index: 6, kind: input, shape index: {}]   ;;  %s888_s7 = inlined_call_operand.vmem [shape: bf16[16,32], index: 7, kind: output, shape index: {0}]   ;;  %s889_s8 = inlined_call_operand.vmem [shape: bf16[16,32], index: 8, kind: output, shape index: {1}]   ;;  %s890_s9 = inlined_call_operand.vmem [shape: bf16[16,32], index: 9, kind: output, shape index: {2}]  }
   0x1 LB: > { %s678_s10 = sadd.s32 4294967295, %s756_s30   ;;  %p682_p0 = scmp.ge.s32.totalorder %s756_s30, 1  ;;  %s756_s30 = sphi %s810_s30, %s20_s30  }
   0x2   : > { %p291_p1 = scmp.lt.s32.totalorder %s756_s30, 3 }
   0x4   : > { %p292_p2 = pnand %p682_p0, %p291_p1 }
   0x5   : > { %v744_v0 = vld [vmem:[%s882_s1] sm:$0xff] (!%p292_p2)   ;;  %v758_v1 = vmov (!%p292_p2), 0.0   ;;  %vm372_vm0 = vcmask (!%p292_p2), 261120   ;;  %p333_p3 = scmp.lt.s32.totalorder (!%p292_p2), %s678_s10, 1  ;;  %v745_v4 = vld [vmem:[%s882_s1 + $0x8] sm:$0xff] (!%p292_p2)   ;;  %vm759_vm1 = vmmov (!%p292_p2), 0  }
   0x6   : > { %295 = sbr.rel (%p292_p2) target bundleno = 255 (0xff), region = 48  ;;  %710 = vmatprep.subr.bf16.mxu0 (!%p292_p2), %v758_v1  ;;  %718 = vmatprep.subr.bf16.mxu1 (!%p292_p2), %v758_v1  ;;  %v377_v2 = vsel (!%p292_p2), %vm372_vm0, %v744_v0, 0  ;;  %v746_v3 = vld [vmem:[%s884_s3] sm:$0xff] (!%p292_p2)   ;;  %v748_v6 = vld [vmem:[%s884_s3 + $0x8] sm:$0xff] (!%p292_p2)   ;;  %v380_v7 = vsel (!%p292_p2), %vm372_vm0, %v745_v4, 0  ;;  %vm423_vm2 = vcmask (!%p292_p2), 257024  }
   0x7   : > { %711 = vmatpush3.bf16.xpose.msra.mxu0 (!%p292_p2), %v377_v2  ;;  %v447_v5 = vsel (!%p292_p2), %vm372_vm0, %v746_v3, 0  ;;  %714 = vmatprep.mubr.msk.bf16.mxu0 (!%p292_p2), %vm759_vm1, %v758_v1  ;;  %v450_v8 = vsel (!%p292_p2), %vm372_vm0, %v748_v6, 0  ;;  %v747_v9 = vld [vmem:[%s886_s5] sm:$0xff] (!%p292_p2)   ;;  %v749_v12 = vld [vmem:[%s886_s5 + $0x8] sm:$0xff] (!%p292_p2)  }
   0x8   : > { %712 = vmatprep.subr.bf16.mxu0 (!%p292_p2), %v758_v1  ;;  %719 = vmatpush3.bf16.xpose.msra.mxu1 (!%p292_p2), %v447_v5  ;;  %v516_v11 = vsel (!%p292_p2), %vm372_vm0, %v747_v9, 0  ;;  %v519_v13 = vsel (!%p292_p2), %vm372_vm0, %v749_v12, 0  ;;  %v687_v14 = vld [vmem:[%s883_s2] ss:$0 sm:$0xff] (!%p292_p2) }
   0x9   : > { %722 = vmatprep.mubr.msk.bf16.mxu1 (!%p292_p2), %vm759_vm1, %v758_v1  ;;  %720 = vmatprep.subr.bf16.mxu1 (!%p292_p2), %v758_v1  ;;  %v691_v16 = vld [vmem:[%s885_s4] ss:$0 sm:$0xff] (!%p292_p2) }
   0xa   : > { %v695_v28 = vld [vmem:[%s887_s6] ss:$0 sm:$0xff] (!%p292_p2) }
   0xd   : > { %s892_s10 = smov (!%p333_p3, %s678_s10), 1 }
   0xe   : > { %s835_s19 = sshll.u32 %s892_s10, 2 }
   0xf   : > { %713 = vmatpush3.bf16.xpose.msra.mxu0 %v380_v7  ;;  %s336_s22 = scalar_lea.vmem %s881_s0, %s835_s19  ;;  %s340_s13 = scalar_lea.vmem %s888_s7, %s835_s19 }
  0x10   : > { %726 = vmatprep.subr.bf16.mxu0 %v758_v1  ;;  %721 = vmatpush3.bf16.xpose.msra.mxu1 %v450_v8  ;;  %v350_v10 = vld [vmem:[%s336_s22] sm:$0xf]  ;;  %s344_s16 = scalar_lea.vmem %s889_s8, %s835_s19  ;;  %s348_s22 = scalar_lea.vmem %s890_s9, %s835_s19 }
  0x16   : > { %715 = vmatmul.mubr.msk.bf16.vlgmr.msra.gmra.mrb[0].mxu0 %vm372_vm0, %v350_v10 }
  0x17   : > { %727 = vmatpush3.bf16.xpose.msra.mxu0 %v516_v11  ;;  %730 = vmatprep.mubr.msk.bf16.mxu0 %vm759_vm1, %v758_v1 }
  0x18   : > { %728 = vmatprep.subr.bf16.mxu0 %v758_v1  ;;  %723 = vmatmul.mubr.msk.bf16.vlgmr.msra.gmra.mrb[0].mxu1 %vm372_vm0, %v350_v10 }
  0x1f   : > { %729 = vmatpush3.bf16.xpose.msra.mxu0 %v519_v13 }
  0x26   : > { %731 = vmatmul.mubr.msk.bf16.vlgmr.msra.gmra.mrb[4].mxu0 %vm372_vm0, %v350_v10 }
  0xe9   : > { %v416_v15 = vpop.f32.mrb[0].mxu0 }
  0xea   : > { %v417_v17 = vadd.f32 %v687_v14, %v416_v15  ;;  %v716_v18 = vpop.f32.mrb[1].mxu0 }
  0xeb   : > { %v419_v19 = vpop.f32.mrb[2].mxu0  ;;  %v486_v20 = vpop.f32.mrb[0].mxu1 }
  0xec   : > { %v422_v21 = vpack.c.bf16 %v417_v17, %v417_v17  ;;  %v717_v22 = vpop.f32.mrb[3].mxu0  ;;  %v487_v23 = vadd.f32 %v691_v16, %v486_v20  ;;  %v724_v24 = vpop.f32.mrb[1].mxu1 }
  0xed   : > { %v489_v25 = vpop.f32.mrb[2].mxu1 }
  0xee   : > { %424 = vst.msk [vmem:[%s340_s13] sm:$0xf] %vm423_vm2, %v422_v21  ;;  %v492_v26 = vpack.c.bf16 %v487_v23, %v487_v23  ;;  %v725_v27 = vpop.f32.mrb[3].mxu1 }
  0xf0   : > { %493 = vst.msk [vmem:[%s344_s16] sm:$0xf] %vm423_vm2, %v492_v26 }
  0xf9   : > { %v555_v29 = vpop.f32.mrb[4].mxu0 }
  0xfa   : > { %v556_v30 = vadd.f32 %v695_v28, %v555_v29  ;;  %v732_v31 = vpop.f32.mrb[5].mxu0 }
  0xfb   : > { %v558_v32 = vpop.f32.mrb[6].mxu0 }
  0xfc   : > { %v561_v33 = vpack.c.bf16 %v556_v30, %v556_v30  ;;  %v733_v34 = vpop.f32.mrb[7].mxu0 }
  0xfe   : > { %562 = vst.msk [vmem:[%s348_s22] sm:$0xf] %vm423_vm2, %v561_v33 }
  0xff PF: > { %s20_s30 = sadd.s32 1, %s756_s30  }
 0x100   : > { %p17_p4 = scmp.ge.s32.totalorder %s20_s30, 4  }
 0x102   :  { %19 = sbr.rel (!%p17_p4) target bundleno = 1 (0x1), region = 102 }

// kernel: encoder_forward.4
= control target key start
LH: loop header
LB: loop body
LE: loop exit
PB: predicated region body
PF: predicated region fallthrough
CT: control target
= control target key end

     0   :  { %s970_s12 = smov 0   ;;  %s972_s13 = smov 0   ;;  %s1063_s0 = inlined_call_operand.vmem [shape: bf16[8,8,8], index: 0, kind: input, shape index: {}]   ;;  %s1064_s1 = inlined_call_operand.vmem [shape: bf16[8,8,8], index: 1, kind: input, shape index: {}]   ;;  %s1065_s2 = inlined_call_operand.vmem [shape: bf16[8,8,8], index: 2, kind: input, shape index: {}]   ;;  %s1066_s3 = inlined_call_operand.vmem [shape: bf16[8,8,8], index: 3, kind: output, shape index: {}]  }
   0x1   :  { %s974_s14 = smov 0  }
   0x2 LB: > { %s25_s15 = sadd.s32 1, %s942_s13  ;;  %p799_p0 = scmp.ge.s32.totalorder %s946_s14, 1  ;;  %s946_s14 = sphi %s974_s14, %s13_s14   ;;  %s942_s13 = sphi %s972_s13, %s1068_s13   ;;  %s938_s12 = sphi %s970_s12, %s1067_s12  }
   0x3   : > { %p27_p1 = scmp.ge.s32.totalorder %s25_s15, 2  ;;  %p179_p2 = scmp.lt.s32.totalorder %s946_s14, 3 }
   0x5   : > { %s1070_s15 = smov (%p27_p1, %s25_s15), 0  ;;  %p180_p3 = pnand %p799_p0, %p179_p2 }
   0x6   : > { %s800_s16 = sshll.u32 (!%p180_p3), %s938_s12, 2  ;;  %v948_v0 = vmov (!%p180_p3), 0.0   ;;  %vm949_vm0 = vmmov (!%p180_p3), 0   ;;  %vm262_vm1 = vcmask (!%p180_p3), 64512   ;;  %vm502_vm2 = vcmask (!%p180_p3), 1043456  }
   0x7   : > { %183 = sbr.rel (%p180_p3) target bundleno = 783 (0x30f), region = 32  ;;  %834 = vmatprep.subr.bf16.mxu0 (!%p180_p3), %v948_v0  ;;  %p220_p4 = scmp.lt.s32.totalorder (!%p180_p3), %s800_s16, 7  ;;  %840 = vmatprep.subr.bf16.mxu1 (!%p180_p3), %v948_v0  ;;  %vm688_vm3 = vcmask (!%p180_p3), 60416  }
   0x8   : > { %836 = vmatprep.mubr.msk.bf16.mxu0 (!%p180_p3), %vm949_vm0, %v948_v0  ;;  %842 = vmatprep.mubr.msk.bf16.mxu1 (!%p180_p3), %vm949_vm0, %v948_v0 }
   0xe   : > { %s1072_s16 = smov (!%p220_p4, %s800_s16), 7 }
   0xf   : > { %s994_s17 = sshll.u32 %s1072_s16, 2 }
  0x10   : > { %s232_s20 = scalar_lea.vmem %s1064_s1, %s994_s17  ;;  %s226_s23 = scalar_lea.vmem %s1063_s0, %s994_s17 }
  0x11   : > { %v254_v1 = vld [vmem:[%s232_s20] sm:$0xf]  ;;  %v255_v2 = vld [vmem:[%s232_s20 + $0x4] sm:$0xf]  ;;  %v256_v5 = vld [vmem:[%s232_s20 + $0x8] sm:$0xf]  ;;  %s238_s26 = scalar_lea.vmem %s1065_s2, %s994_s17  ;;  %s247_s29 = scalar_lea.vmem %s1066_s3, %s994_s17 }
  0x12   : > { %v267_v3 = vsel %vm262_vm1, %v254_v1, 0  ;;  %v313_v4 = vsel %vm262_vm1, %v255_v2, 0  ;;  %v257_v6 = vld [vmem:[%s232_s20 + $0xc] sm:$0xf]  ;;  %v250_v7 = vld [vmem:[%s226_s23] sm:$0xf] }
  0x13   : > { %835 = vmatpush3.bf16.xpose.msra.mxu0 %v267_v3  ;;  %841 = vmatpush3.bf16.xpose.msra.mxu1 %v313_v4  ;;  %v251_v8 = vld [vmem:[%s226_s23 + $0x4] sm:$0xf]  ;;  %v359_v9 = vsel %vm262_vm1, %v256_v5, 0  ;;  %v405_v10 = vsel %vm262_vm1, %v257_v6, 0  ;;  %v252_v11 = vld [vmem:[%s226_s23 + $0x8] sm:$0xf] }
  0x14   : > { %846 = vmatprep.subr.bf16.mxu0 %v948_v0  ;;  %852 = vmatprep.subr.bf16.mxu1 %v948_v0  ;;  %v253_v12 = vld [vmem:[%s226_s23 + $0xc] sm:$0xf]  ;;  %v258_v57 = vld [vmem:[%s238_s26] sm:$0xf]  ;;  %v259_v59 = vld [vmem:[%s238_s26 + $0x4] sm:$0xf] }
  0x15   : > { %v504_v58 = vsel %vm502_vm2, %v258_v57, 0  ;;  %v550_v60 = vsel %vm502_vm2, %v259_v59, 0  ;;  %v260_v61 = vld [vmem:[%s238_s26 + $0x8] sm:$0xf]  ;;  %v261_v63 = vld [vmem:[%s238_s26 + $0xc] sm:$0xf] }
  0x16   : > { %v596_v62 = vsel %vm502_vm2, %v260_v61, 0  ;;  %v642_v1 = vsel %vm502_vm2, %v261_v63, 0 }
  0x1a   : > { %837 = vmatmul.mubr.msk.bf16.vlgmr.msra.gmra.mrb[0].mxu0 %vm262_vm1, %v250_v7  ;;  %843 = vmatmul.mubr.msk.bf16.vlgmr.msra.gmra.mrb[0].mxu1 %vm262_vm1, %v251_v8 }
  0x1b   : > { %847 = vmatpush3.bf16.xpose.msra.mxu0 %v359_v9  ;;  %853 = vmatpush3.bf16.xpose.msra.mxu1 %v405_v10 }
  0x1c   : > { %848 = vmatprep.mubr.msk.bf16.mxu0 %vm949_vm0, %v948_v0  ;;  %854 = vmatprep.mubr.msk.bf16.mxu1 %vm949_vm0, %v948_v0 }
  0x1d   : > { %858 = vmatprep.subr.bf16.mxu0 %v948_v0  ;;  %864 = vmatprep.subr.bf16.mxu1 %v948_v0 }
  0x22   : > { %849 = vmatmul.mubr.msk.bf16.vlgmr.msra.gmra.mrb[4].mxu0 %vm262_vm1, %v252_v11  ;;  %855 = vmatmul.mubr.msk.bf16.vlgmr.msra.gmra.mrb[4].mxu1 %vm262_vm1, %v253_v12 }
  0x23   : > { %860 = vmatprep.mubr.msk.bf16.mxu0 %vm949_vm0, %v948_v0  ;;  %866 = vmatprep.mubr.msk.bf16.mxu1 %vm949_vm0, %v948_v0 }
  0x24   : > { %859 = vmatpush3.bf16.msra.mxu0 %v504_v58  ;;  %865 = vmatpush3.bf16.msra.mxu1 %v550_v60 }
  0x25   : > { %870 = vmatprep.subr.bf16.mxu0 %v948_v0  ;;  %876 = vmatprep.subr.bf16.mxu1 %v948_v0 }
  0xed   : > { %v303_v13 = vpop.f32.mrb[0].mxu0  ;;  %v349_v14 = vpop.f32.mrb[0].mxu1 }
  0xee   : > { %v447_v15 = vmul.f32 0.35355338, %v303_v13  ;;  %v838_v16 = vpop.f32.mrb[1].mxu0  ;;  %v448_v17 = vmul.f32 0.35355338, %v349_v14  ;;  %v844_v18 = vpop.f32.mrb[1].mxu1 }
  0xef   : > { %v306_v19 = vpop.f32.mrb[2].mxu0  ;;  %v352_v20 = vpop.f32.mrb[2].mxu1 }
  0xf0   : > { %v839_v21 = vpop.f32.mrb[3].mxu0  ;;  %v451_v22 = vsel %vm262_vm1, %v447_v15, -inf  ;;  %v845_v23 = vpop.f32.mrb[3].mxu1  ;;  %v454_v24 = vsel %vm262_vm1, %v448_v17, -inf }
  0xf1   : > { %452 = vmax.xlane.f32.xlu0 %v451_v22 }
  0xf5   : > { %455 = vmax.xlane.f32.xlu0 %v454_v24  ;;  %v395_v25 = vpop.f32.mrb[4].mxu0  ;;  %v441_v26 = vpop.f32.mrb[4].mxu1 }
  0xf6   : > { %v449_v27 = vmul.f32 0.35355338, %v395_v25  ;;  %v850_v28 = vpop.f32.mrb[5].mxu0  ;;  %v450_v29 = vmul.f32 0.35355338, %v441_v26  ;;  %v856_v30 = vpop.f32.mrb[5].mxu1 }
  0xf7   : > { %v398_v31 = vpop.f32.mrb[6].mxu0  ;;  %v444_v32 = vpop.f32.mrb[6].mxu1 }
  0xf8   : > { %v851_v33 = vpop.f32.mrb[7].mxu0  ;;  %v457_v34 = vsel %vm262_vm1, %v449_v27, -inf  ;;  %v857_v35 = vpop.f32.mrb[7].mxu1  ;;  %v460_v36 = vsel %vm262_vm1, %v450_v29, -inf }
  0xf9   : > { %458 = vmax.xlane.f32.xlu1 %v457_v34 }
  0xfd   : > { %461 = vmax.xlane.f32.xlu1 %v460_v36 }
 0x17e   : > { %v453_v37 = vpop.xlane.xlu0 %452 }
 0x17f   : > { %v463_v38 = vsub.f32 %v447_v15, %v453_v37 }
 0x181   : > { %v467_v39 = vmul.f32 1.442695, %v463_v38 }
 0x182   : > { %v456_v40 = vpop.xlane.xlu0 %455 }
 0x183   : > { %908 = vpow2.f32 %v467_v39  ;;  %v464_v41 = vsub.f32 %v448_v17, %v456_v40 }
 0x185   : > { %v469_v42 = vmul.f32 1.442695, %v464_v41 }
 0x186   : > { %v459_v43 = vpop.xlane.xlu1 %458 }
 0x187   : > { %910 = vpow2.f32 %v469_v42  ;;  %v465_v44 = vsub.f32 %v449_v27, %v459_v43 }
 0x189   : > { %v471_v45 = vmul.f32 1.442695, %v465_v44 }
 0x18a   : > { %v462_v46 = vpop.xlane.xlu1 %461 }
 0x18b   : > { %912 = vpow2.f32 %v471_v45  ;;  %v466_v47 = vsub.f32 %v450_v29, %v462_v46 }
 0x18d   : > { %v909_v48 = vpop.eup %908  ;;  %v473_v49 = vmul.f32 1.442695, %v466_v47 }
 0x18e   : > { %v475_v50 = vsel %vm262_vm1, %v909_v48, 0.0 }
 0x18f   : > { %914 = vpow2.f32 %v473_v49  ;;  %476 = vadd.xlane.f32.xlu0 %v475_v50 }
 0x191   : > { %v911_v51 = vpop.eup %910 }
 0x192   : > { %v478_v52 = vsel %vm262_vm1, %v911_v51, 0.0 }
 0x193   : > { %479 = vadd.xlane.f32.xlu1 %v478_v52 }
 0x195   : > { %v913_v53 = vpop.eup %912 }
 0x196   : > { %v481_v54 = vsel %vm262_vm1, %v913_v53, 0.0 }
 0x197   : > { %482 = vadd.xlane.f32.xlu0 %v481_v54 }
 0x199   : > { %v915_v55 = vpop.eup %914 }
 0x19a   : > { %v484_v56 = vsel %vm262_vm1, %v915_v55, 0.0 }
 0x19b   : > { %485 = vadd.xlane.f32.xlu1 %v484_v56 }
 0x21c   : > { %v477_v2 = vpop.xlane.xlu0 %476 }
 0x21d   : > { %916 = vrcp.f32 %v477_v2 }
 0x220   : > { %v480_v3 = vpop.xlane.xlu1 %479 }
 0x221   : > { %918 = vrcp.f32 %v480_v3 }
 0x224   : > { %v483_v4 = vpop.xlane.xlu0 %482 }
 0x225   : > { %920 = vrcp.f32 %v483_v4 }
 0x227   : > { %v917_v5 = vpop.eup %916 }
 0x228   : > { %v488_v6 = vmul.f32 %v917_v5, %v909_v48  ;;  %v486_v7 = vpop.xlane.xlu1 %485 }
 0x229   : > { %922 = vrcp.f32 %v486_v7 }
 0x22a   : > { %v495_v8 = vpack.c.bf16 %v488_v6, %v488_v6 }
 0x22b   : > { %v919_v9 = vpop.eup %918 }
 0x22c   : > { %v490_v10 = vmul.f32 %v919_v9, %v911_v51  ;;  %861 = vmatmul.mubr.msk.bf16.vlgmr.msra.gmra.mrb[8].mxu0 %vm262_vm1, %v495_v8 }
 0x22d   : > { %871 = vmatpush3.bf16.msra.mxu0 %v596_v62  ;;  %872 = vmatprep.mubr.msk.bf16.mxu0 %vm949_vm0, %v948_v0 }
 0x22e   : > { %v496_v11 = vpack.c.bf16 %v490_v10, %v490_v10 }
 0x22f   : > { %v921_v12 = vpop.eup %920 }
 0x230   : > { %v492_v13 = vmul.f32 %v921_v12, %v913_v53  ;;  %867 = vmatmul.mubr.msk.bf16.vlgmr.msra.gmra.mrb[8].mxu1 %vm262_vm1, %v496_v11 }
 0x231   : > { %877 = vmatpush3.bf16.msra.mxu1 %v642_v1  ;;  %878 = vmatprep.mubr.msk.bf16.mxu1 %vm949_vm0, %v948_v0 }
 0x232   : > { %v497_v14 = vpack.c.bf16 %v492_v13, %v492_v13 }
 0x233   : > { %v923_v15 = vpop.eup %922 }
 0x234   : > { %v494_v16 = vmul.f32 %v923_v15, %v915_v55  ;;  %873 = vmatmul.mubr.msk.bf16.vlgmr.msra.gmra.mrb[12].mxu0 %vm262_vm1, %v497_v14 }
 0x236   : > { %v498_v17 = vpack.c.bf16 %v494_v16, %v494_v16 }
 0x238   : > { %879 = vmatmul.mubr.msk.bf16.vlgmr.msra.gmra.mrb[12].mxu1 %vm262_vm1, %v498_v17 }
 0x2ff   : > { %v540_v18 = vpop.f32.mrb[8].mxu0 }
 0x300   : > { %v684_v19 = vpack.c.bf16 %v540_v18, %v540_v18  ;;  %v862_v20 = vpop.f32.mrb[9].mxu0 }
 0x301   : > { %v543_v21 = vpop.f32.mrb[10].mxu0 }
 0x302   : > { %689 = vst.msk [vmem:[%s247_s29] sm:$0xf] %vm688_vm3, %v684_v19  ;;  %v863_v0 = vpop.f32.mrb[11].mxu0 }
 0x303   : > { %v586_v22 = vpop.f32.mrb[8].mxu1 }
 0x304   : > { %v685_v23 = vpack.c.bf16 %v586_v22, %v586_v22  ;;  %v868_v24 = vpop.f32.mrb[9].mxu1 }
 0x305   : > { %v589_v25 = vpop.f32.mrb[10].mxu1 }
 0x306   : > { %690 = vst.msk [vmem:[%s247_s29 + $0x4] sm:$0xf] %vm688_vm3, %v685_v23  ;;  %v869_v26 = vpop.f32.mrb[11].mxu1 }
 0x307   : > { %v632_v27 = vpop.f32.mrb[12].mxu0 }
 0x308   : > { %v686_v28 = vpack.c.bf16 %v632_v27, %v632_v27  ;;  %v874_v29 = vpop.f32.mrb[13].mxu0 }
 0x309   : > { %v635_v30 = vpop.f32.mrb[14].mxu0 }
 0x30a   : > { %691 = vst.msk [vmem:[%s247_s29 + $0x8] sm:$0xf] %vm688_vm3, %v686_v28  ;;  %v875_v31 = vpop.f32.mrb[15].mxu0 }
 0x30b   : > { %v678_v32 = vpop.f32.mrb[12].mxu1 }
 0x30c   : > { %v687_v33 = vpack.c.bf16 %v678_v32, %v678_v32  ;;  %v880_v34 = vpop.f32.mrb[13].mxu1 }
 0x30d   : > { %v681_v35 = vpop.f32.mrb[14].mxu1 }
 0x30e   : > { %692 = vst.msk [vmem:[%s247_s29 + $0xc] sm:$0xf] %vm688_vm3, %v687_v33  ;;  %v881_v36 = vpop.f32.mrb[15].mxu1 }
 0x30f PF: > { %s13_s14 = sadd.s32 1, %s946_s14   ;;  %s1067_s12 = smov %s942_s13 }
 0x310   : > { %p10_p5 = scmp.ge.s32.totalorder %s13_s14, 4   ;;  %s1068_s13 = smov %s1070_s15 }
 0x312   :  { %12 = sbr.rel (!%p10_p5) target bundleno = 2 (0x2), region = 68 }

// kernel: encoder_forward.5
= control target key start
LH: loop header
LB: loop body
LE: loop exit
PB: predicated region body
PF: predicated region fallthrough
CT: control target
= control target key end

     0   :  { %13 = vsyncpa [#allocation5], 0  ;;  %s1207_s0 = inlined_call_operand.vmem [shape: bf16[16,32], index: 0, kind: input, shape index: {}]   ;;  %s1208_s1 = inlined_call_operand.vmem [shape: f32[16,32], index: 1, kind: input, shape index: {}]   ;;  %s1209_s2 = inlined_call_operand.vmem [shape: bf16[32,32], index: 2, kind: input, shape index: {}]   ;;  %s1210_s3 = inlined_call_operand.vmem [shape: f32[1,32], index: 3, kind: input, shape index: {}]   ;;  %s1211_s4 = inlined_call_operand.vmem [shape: bf16[64,32], index: 4, kind: input, shape index: {}]   ;;  %s1212_s5 = inlined_call_operand.vmem [shape: f32[1,64], index: 5, kind: input, shape index: {}]   ;;  %s1213_s6 = inlined_call_operand.vmem [shape: bf16[32,64], index: 6, kind: input, shape index: {}]   ;;  %s1214_s7 = inlined_call_operand.vmem [shape: f32[1,32], index: 7, kind: input, shape index: {}]   ;;  %s1215_s8 = inlined_call_operand.hbm [shape: f32[16,32], index: 8, kind: output, shape index: {}]  }
   0x1   :  { %15 = vsyncpa [#allocation5 + $0x1], 0  ;;  %s1037_s27 = smov 0   ;;  %s1039_s28 = smov 0  }
   0x2   :  { %s1041_s29 = smov 0   ;;  %s1043_s30 = smov 0  }
   0x3   :  { %s1045_s9 = smov 0   ;;  %s1047_s10 = smov 0  }
   0x4 LB: > { %s776_s11 = sadd.s32 4294967295, %s987_s10   ;;  %s777_s12 = sadd.s32 4294967294, %s987_s10   ;;  %s987_s10 = sphi %s1047_s10, %s21_s10   ;;  %s983_s9 = sphi %s1045_s9, %s1222_s9   ;;  %s979_s30 = sphi %s1043_s30, %s1221_s30   ;;  %s975_s29 = sphi %s1041_s29, %s1220_s29   ;;  %s971_s28 = sphi %s1039_s28, %s1219_s28   ;;  %s967_s27 = sphi %s1037_s27, %s1218_s27  }
   0x5   : > { %s33_s13 = sadd.s32 1, %s983_s9  ;;  %s233_s14 = sadd.s32 1, %s975_s29 }
   0x6   : > { %p35_p0 = scmp.ge.s32.totalorder %s33_s13, 2  ;;  %p243_p1 = scmp.ne.s32.totalorder %s975_s29, %s971_s28 }
   0x7   : > { %p244_p2 = scmp.eq.s32.totalorder %s776_s11, 1  ;;  %p249_p3 = scmp.ne.s32.totalorder %s971_s28, %s967_s27 }
   0x8   : > { %s1224_s13 = smov (%p35_p0, %s33_s13), 0  ;;  %p250_p5 = scmp.eq.s32.totalorder %s777_s12, 1 }
   0x9   : > { %p1077_p4 = por %p244_p2, %p243_p1  ;;  %s230_s16 = ssub.s32 %s983_s9, %s1224_s13 }
   0xa   : > { %p783_p6 = scmp.ge.s32.totalorder %s987_s10, 1  ;;  %p231_p7 = scmp.eq.s32.totalorder %s230_s16, 0 }
   0xb   : > { %p1084_p8 = por %p250_p5, %p249_p3  ;;  %p313_p9 = scmp.lt.s32.totalorder %s987_s10, 3 }
   0xc   : > { %s1090_s18 = scalar_select %p231_p7, %s975_s29, %s233_s14  }
   0xd   : > { %p314_p10 = pnand %p783_p6, %p313_p9 }
   0xe   : > { %v901_v0 = vld [vmem:[%s1209_s2] sm:$0xff] (!%p314_p10)   ;;  %v989_v1 = vmov (!%p314_p10), 0.0   ;;  %vm410_vm0 = vcmask (!%p314_p10), 261120   ;;  %p362_p11 = scmp.lt.s32.totalorder (!%p314_p10), %s979_s30, 1  ;;  %vm990_vm1 = vmmov (!%p314_p10), 0   ;;  %v902_v4 = vld [vmem:[%s1209_s2 + $0x8] sm:$0xff] (!%p314_p10)  }
   0xf   : > { %317 = sbr.rel (%p314_p10) target bundleno = 715 (0x2cb), region = 52  ;;  %816 = vmatprep.subr.bf16.mxu0 (!%p314_p10), %v989_v1  ;;  %824 = vmatprep.subr.bf16.mxu1 (!%p314_p10), %v989_v1  ;;  %v415_v2 = vsel (!%p314_p10), %vm410_vm0, %v901_v0, 0  ;;  %463 = vst.msk [vmem:[#allocation3] sm:$0xff] (!%p314_p10), %vm410_vm0, %v989_v1  ;;  %v903_v3 = vld [vmem:[%s1211_s4] sm:$0xff] (!%p314_p10)   ;;  %v904_v6 = vld [vmem:[%s1211_s4 + $0x8] sm:$0xff] (!%p314_p10)   ;;  %v418_v7 = vsel (!%p314_p10), %vm410_vm0, %v902_v4, 0 }
  0x10   : > { %817 = vmatpush3.bf16.xpose.msra.mxu0 (!%p314_p10), %v415_v2  ;;  %820 = vmatprep.mubr.msk.bf16.mxu0 (!%p314_p10), %vm990_vm1, %v989_v1  ;;  %v506_v5 = vsel (!%p314_p10), %vm410_vm0, %v903_v3, 0  ;;  %v509_v8 = vsel (!%p314_p10), %vm410_vm0, %v904_v6, 0  ;;  %v905_v10 = vld [vmem:[%s1211_s4 + $0x10] sm:$0xff] (!%p314_p10)   ;;  %v906_v12 = vld [vmem:[%s1211_s4 + $0x18] sm:$0xff] (!%p314_p10)   ;;  %v907_v14 = vld [vmem:[%s1213_s6] sm:$0xff] (!%p314_p10)   ;;  %vm574_vm2 = vcmask (!%p314_p10), 523264  }
  0x11   : > { %818 = vmatprep.subr.bf16.mxu0 (!%p314_p10), %v989_v1  ;;  %832 = vmatprep.mubr.msk.bf16.mxu1 (!%p314_p10), %vm990_vm1, %v989_v1  ;;  %v512_v11 = vsel (!%p314_p10), %vm410_vm0, %v905_v10, 0  ;;  %v515_v13 = vsel (!%p314_p10), %vm410_vm0, %v906_v12, 0  ;;  %v579_v15 = vsel (!%p314_p10), %vm574_vm2, %v907_v14, 0  ;;  %v787_v16 = vld [vmem:[%s1210_s3] ss:$0 sm:$0xff] (!%p314_p10)  ;;  %v908_v26 = vld [vmem:[%s1213_s6 + $0x8] sm:$0xff] (!%p314_p10)  }
  0x12   : > { %825 = vmatpush3.bf16.xpose.msra.mxu1 (!%p314_p10), %v506_v5  ;;  %v582_v27 = vsel (!%p314_p10), %vm574_vm2, %v908_v26, 0  ;;  %v791_v28 = vld [vmem:[%s1212_s5] ss:$0 sm:$0xff] (!%p314_p10)  ;;  %s359_s24 = sand.u32 (!%p314_p10), 1, %s971_s28   ;;  %s802_s14 = sshll.u32 (!%p314_p10), %s979_s30, 7 }
  0x13   : > { %826 = vmatprep.subr.bf16.mxu1 (!%p314_p10), %v989_v1  ;;  %s784_s26 = sshll.u32 (!%p314_p10), %s359_s24, 3  ;;  %v800_v42 = vld [vmem:[%s1214_s7] ss:$0 sm:$0xff] (!%p314_p10)  ;;  %s1159_s21 = scalar_lea.hbm (!%p314_p10), %s1215_s8, %s802_s14 }
  0x14   : > { %s642_s22 = scalar_lea.sflag (!%p314_p10), [#allocation5], %s359_s24 }
  0x16   : > { %s1108_s25 = scalar_select %p362_p11, %s979_s30, 1  ;;  %v558_v36 = vld [vmem:[#allocation3] sm:$0xff] }
  0x17   : > { %s991_s30 = smov [#allocation4]  }
  0x18   : > { %s785_s12 = sshll.u32 %s1108_s25, 2  ;;  %819 = vmatpush3.bf16.xpose.msra.mxu0 %v418_v7  ;;  %s786_s11 = sshll.u32 %s1108_s25, 3 }
  0x19   : > { %s365_s19 = scalar_lea.vmem %s1207_s0, %s785_s12  ;;  %836 = vmatprep.subr.bf16.mxu0 %v989_v1  ;;  %s369_s16 = scalar_lea.vmem %s1208_s1, %s786_s11 }
  0x1a   : > { %827 = vmatpush3.bf16.xpose.msra.mxu1 %v509_v8  ;;  %v388_v9 = vld [vmem:[%s365_s19] sm:$0xf] }
  0x1b   : > { %828 = vmatprep.subr.bf16.mxu1 %v989_v1  ;;  %v460_v18 = vld [vmem:[%s369_s16] sm:$0xff]  ;;  %s361_s16 = scalar_lea.vmem [#allocation4], %s784_s26  ;;  %s913_s26 = sshll.u32 %s991_s30, 4  ;;  %s914_s26 = int_to_ptr.vmem [resolvable:$false] %s913_s26 }
  0x1c   : > { %s655_s19 = sshll.u32 %s361_s16, 4  ;;  %s915_s11 = scalar_lea.vmem %s914_s26, 256  ;;  %s1161_s19 = int_to_ptr.vmem [resolvable:$true] %s655_s19 }
  0x1d   : > { %s909_s23 = scalar_lea.vmem %s1161_s19, 128  ;;  %p916_p1 = scmp.lt.s32.totalorder %s1161_s19, %s914_s26 }
  0x1e   : > { %p910_p12 = scmp.ne.s32.totalorder %s1161_s19, %s909_s23  ;;  %p917_p2 = scmp.lt.s32.totalorder %s915_s11, %s909_s23 }
  0x1f   : > { %821 = vmatmul.mubr.msk.bf16.vlgmr.msra.gmra.mrb[0].mxu0 %vm410_vm0, %v388_v9 }
  0x20   : > { %840 = vmatprep.mubr.msk.bf16.mxu0 %vm990_vm1, %v989_v1  ;;  %837 = vmatpush3.bf16.xpose.msra.mxu0 %v579_v15  ;;  %p911_p13 = pnand %p910_p12, %p1077_p4  ;;  %p918_p3 = por %p917_p2, %p916_p1 }
  0x21   : > { %838 = vmatprep.subr.bf16.mxu0 %v989_v1 }
  0x22   : > { %829 = vmatpush3.bf16.xpose.msra.mxu1 %v512_v11  ;;  %p912_p0 = pneg %p911_p13 }
  0x23   : > { %830 = vmatprep.subr.bf16.mxu1 %v989_v1 }
  0x24   : > { %p919_p5 = pnand %p918_p3, %p912_p0 }
  0x28   : > { %839 = vmatpush3.bf16.xpose.msra.mxu0 %v582_v27 }
  0x2a   : > { %831 = vmatpush3.bf16.xpose.msra.mxu1 %v515_v13 }
  0xf2   : > { %v454_v17 = vpop.f32.mrb[0].mxu0 }
  0xf3   : > { %v455_v19 = vadd.f32 %v787_v16, %v454_v17  ;;  %v822_v20 = vpop.f32.mrb[1].mxu0 }
  0xf4   : > { %v457_v21 = vpop.f32.mrb[2].mxu0 }
  0xf5   : > { %v461_v22 = vadd.f32 %v460_v18, %v455_v19  ;;  %v823_v23 = vpop.f32.mrb[3].mxu0 }
  0xf7   : > { %462 = vst.msk [vmem:[#allocation2] sm:$0xff] %vm410_vm0, %v461_v22 }
  0xfe   : > { %v464_v24 = vld [vmem:[#allocation2] sm:$0xff] }
  0xff   : > { %v465_v25 = vpack.c.bf16 %v464_v24, %v464_v24 }
 0x101   : > { %833 = vmatmul.mubr.msk.bf16.vlgmr.msra.gmra.mrb[0].mxu1 %vm410_vm0, %v465_v25 }
 0x1d4   : > { %v551_v29 = vpop.f32.mrb[0].mxu1 }
 0x1d5   : > { %v552_v30 = vadd.f32 %v791_v28, %v551_v29  ;;  %v834_v31 = vpop.f32.mrb[1].mxu1 }
 0x1d6   : > { %v554_v32 = vpop.f32.mrb[2].mxu1 }
 0x1d7   : > { %v557_v33 = vmax.f32 %v552_v30, 0.0  ;;  %v835_v34 = vpop.f32.mrb[3].mxu1 }
 0x1d9   : > { %v559_v35 = vpack.c.bf16 %v557_v33, %v557_v33 }
 0x1db   : > { %841 = vmatmul.mubr.msk.bf16.vlgmr.msra.gmra.mrb[4].mxu0 %vm574_vm2, %v559_v35 }
 0x2ae   : > { %v618_v37 = vpop.f32.mrb[4].mxu0 }
 0x2af   : > { %v624_v38 = vadd.f32 %v618_v37, %v558_v36  ;;  %v842_v39 = vpop.f32.mrb[5].mxu0 }
 0x2b0   : > { %v621_v40 = vpop.f32.mrb[6].mxu0 }
 0x2b1   : > { %625 = vst.msk [vmem:[#allocation3] sm:$0xff] %vm410_vm0, %v624_v38  ;;  %v843_v41 = vpop.f32.mrb[7].mxu0 }
 0x2b8   : > { %v629_v43 = vld [vmem:[#allocation3] sm:$0xff] }
 0x2b9   : > { %v637_v44 = vadd.f32 %v800_v42, %v629_v43 }
 0x2bb   : > { %v639_v45 = vadd.f32 %v637_v44, %v464_v24 }
 0x2bd   : > { %640 = vst.msk [vmem:[%s361_s16] sm:$0xff] %vm410_vm0, %v639_v45 }
 0x2be   : > { %922 = shalt.err (!%p919_p5)
}
 0x2bf   : > { %s923_s24 = scalar_lea.hbm %s1159_s21, 128  ;;  %s927_s16 = scalar_lea.hbm %s1215_s8, 256 }
 0x2c0   : > { %p924_p6 = scmp.ne.s32.totalorder %s1159_s21, %s923_s24  ;;  %p928_p10 = scmp.lt.u32.totalorder %s1159_s21, %s1215_s8 }
 0x2c1   : > { %p929_p11 = scmp.lt.u32.totalorder %s927_s16, %s923_s24  ;;  %p931_p13 = scmp.lt.u32.totalorder %s923_s24, %s1159_s21 }
 0x2c2   : > { %p925_p7 = pnand %p924_p6, %p1077_p4 }
 0x2c3   : > { %p930_p12 = por %p929_p11, %p928_p10 }
 0x2c4   : > { %p926_p9 = pneg %p925_p7 }
 0x2c5   : > { %p932_p0 = por %p931_p13, %p930_p12 }
 0x2c7   : > { %p933_p1 = pnand %p932_p0, %p926_p9 }
 0x2c9   : > { %936 = shalt.err (!%p933_p1)
}
 0x2ca   : > { %844 = dma.vmem_to_hbm [thread:$0]  (%p1077_p4), %s1161_s19, 128, %s1159_s21, %s642_s22  }
 0x2cb PF: > { %p850_p2 = scmp.ge.s32.totalorder %s987_s10, 2  ;;  %s667_s23 = sand.u32 1, %s967_s27  }
 0x2cc   : > { %s668_s30 = scalar_lea.sflag [#allocation5], %s667_s23 }
 0x2cd   : > { %p847_p3 = pnand %p850_p2, %p1084_p8 }
 0x2cf   : > { %962 = dma.done.wait (!%p847_p3), %s668_s30, 128  }
 0x2d0   : > { %964 = vsyncadd (!%p847_p3), %s668_s30, 4294967168  ;;  %s21_s10 = sadd.s32 1, %s987_s10   ;;  %s1218_s27 = smov %s971_s28 }
 0x2d1   : > { %p18_p5 = scmp.ge.s32.totalorder %s21_s10, 4   ;;  %s1219_s28 = smov %s975_s29 }
 0x2d2   : > { %s1220_s29 = smov %s1090_s18  ;;  %s1221_s30 = smov %s983_s9 }
 0x2d3   : > { %s1222_s9 = smov %s1224_s13  ;;  %20 = sbr.rel (!%p18_p5) target bundleno = 4 (0x4), region = 107 }
 0x2da   :  { %673 = vsyncpa [#allocation5], 1 }
 0x2db   :  { %675 = vsyncpa [#allocation5 + $0x1], 1 }

</bundles_post_ra>
